<compile_context>
chip_gen: v7x
topology: tpu7x:2x2x1
jax: 0.10.0
libtpu: 0.0.40
codegen_flags: <defaults>
</compile_context>

<pallas_src>
import jax
import jax.numpy as jnp
from jax.experimental import pallas as pl
from jax.experimental.pallas import tpu as pltpu

EPS = 1e-9
LANES = 128

# layer order in the packed slabs
LAYERS = ("ph0", "ph1", "o0", "o1", "z0", "z1", "z2", "m0", "m1", "m2")


def _round_up(x, m):
    return ((x + m - 1) // m) * m


def _softplus(x):
    # numerically-stable softplus (VPU + EUP ops)
    return jnp.maximum(x, 0.0) + jnp.log(1.0 + jnp.exp(-jnp.abs(x)))


# ----------------------------------------------------------------------------
# static packing layout
# ----------------------------------------------------------------------------
def make_layout(obs, zs, msg, h_pos, h_z, h_obs, h_msg):
    dims = {
        "ph0": (2, 2 * h_pos),
        "ph1": (2 * h_pos, h_pos),
        "o0": (h_pos, 4 * h_obs),            # fused [oa0 || ot0]
        "o1": (4 * h_obs, 4 * obs),          # block-diag [oa1, ot1]
        "z0": (h_pos + 2 * obs, 2 * h_z),
        "z1": (2 * h_z, h_z),
        "z2": (h_z, 2 * zs),
        "m0": (2 * obs + 2 + zs, 2 * h_msg),
        "m1": (2 * h_msg, h_msg),
        "m2": (h_msg, msg),
    }
    layers = {}
    row = 0
    for i, name in enumerate(LAYERS):
        k, n = dims[name]
        assert k <= LANES and n <= LANES, "layer exceeds single 128-lane tile"
        kpad = _round_up(k, 8)
        layers[name] = dict(row=row, k=k, kpad=kpad, n=n, brow=i)
        row += kpad
    data_w = 2 + 2 * obs + zs + msg
    data_cols = dict(
        pos=(0, 2),
        eps_oa=(2, 2 + obs),
        eps_ot=(2 + obs, 2 + 2 * obs),
        eps_z=(2 + 2 * obs, 2 + 2 * obs + zs),
        msg=(2 + 2 * obs + zs, data_w),
    )
    out_cols = dict(
        oa=(0, obs),
        ot=(obs, 2 * obs),
        z=(2 * obs, 2 * obs + zs),
        mm=(2 * obs + zs, 2 * obs + zs + msg),
        bce=(2 * obs + zs + msg, 2 * obs + zs + msg + 1),
    )
    return dict(
        layers=layers,
        w_rows=_round_up(row, 8),
        b_rows=_round_up(len(LAYERS), 8),
        data_w=data_w,
        data_cols=data_cols,
        out_cols=out_cols,
        sizes=dict(obs=obs, zs=zs, msg=msg, h_pos=h_pos, h_z=h_z,
                   h_obs=h_obs, h_msg=h_msg),
    )


def init_linear(key, fan_in, fan_out):
    """PyTorch nn.Linear default init; W stored (in, out)."""
    k1, k2 = jax.random.split(key)
    bound = 1.0 / float(fan_in) ** 0.5
    w = jax.random.uniform(k1, (fan_in, fan_out), jnp.float32, -bound, bound)
    b = jax.random.uniform(k2, (fan_out,), jnp.float32, -bound, bound)
    return w, b


def build_raw_params(key, obs, zs, msg, h_pos, h_z, h_obs, h_msg):
    ks = jax.random.split(key, 12)
    raw = {}
    raw["ph0"] = init_linear(ks[0], 2, 2 * h_pos)
    raw["ph1"] = init_linear(ks[1], 2 * h_pos, h_pos)
    raw["oa0"] = init_linear(ks[2], h_pos, 2 * h_obs)
    raw["oa1"] = init_linear(ks[3], 2 * h_obs, 2 * obs)
    raw["ot0"] = init_linear(ks[4], h_pos, 2 * h_obs)
    raw["ot1"] = init_linear(ks[5], 2 * h_obs, 2 * obs)
    raw["z0"] = init_linear(ks[6], h_pos + 2 * obs, 2 * h_z)
    raw["z1"] = init_linear(ks[7], 2 * h_z, h_z)
    raw["z2"] = init_linear(ks[8], h_z, 2 * zs)
    raw["m0"] = init_linear(ks[9], 2 * obs + 2 + zs, 2 * h_msg)
    raw["m1"] = init_linear(ks[10], 2 * h_msg, h_msg)
    raw["m2"] = init_linear(ks[11], h_msg, msg)
    return raw


def pack_params(layout, raw):
    """Pack all weights/biases into one weight slab and one bias slab."""
    L = layout["layers"]
    obs = layout["sizes"]["obs"]
    h_obs = layout["sizes"]["h_obs"]

    fused = {"ph0": raw["ph0"], "ph1": raw["ph1"]}
    # fused obs heads: first layer lane-concat, second layer block-diagonal
    w_oa0, b_oa0 = raw["oa0"]
    w_ot0, b_ot0 = raw["ot0"]
    fused["o0"] = (jnp.concatenate([w_oa0, w_ot0], axis=1),
                   jnp.concatenate([b_oa0, b_ot0], axis=0))
    w_oa1, b_oa1 = raw["oa1"]
    w_ot1, b_ot1 = raw["ot1"]
    w_o1 = jnp.zeros((4 * h_obs, 4 * obs), jnp.float32)
    w_o1 = w_o1.at[: 2 * h_obs, : 2 * obs].set(w_oa1)
    w_o1 = w_o1.at[2 * h_obs:, 2 * obs:].set(w_ot1)
    fused["o1"] = (w_o1, jnp.concatenate([b_oa1, b_ot1], axis=0))
    for name in ("z0", "z1", "z2", "m0", "m1", "m2"):
        fused[name] = raw[name]

    w_slab = jnp.zeros((layout["w_rows"], LANES), jnp.float32)
    b_slab = jnp.zeros((layout["b_rows"], LANES), jnp.float32)
    for name in LAYERS:
        w, b = fused[name]
        meta = L[name]
        assert w.shape == (meta["k"], meta["n"])
        w_slab = w_slab.at[meta["row"]: meta["row"] + meta["k"], : meta["n"]].set(w)
        b_slab = b_slab.at[meta["brow"], : meta["n"]].set(b)
    return w_slab, b_slab


# ----------------------------------------------------------------------------
# kernel
# ----------------------------------------------------------------------------
def _make_kernel(layout, rows):
    L = layout["layers"]
    dc = layout["data_cols"]
    obs = layout["sizes"]["obs"]
    zs = layout["sizes"]["zs"]
    msg = layout["sizes"]["msg"]
    h_pos = layout["sizes"]["h_pos"]

    def kernel(data_ref, w_ref, b_ref, out_ref):
        def layer(name, x, act):
            meta = L[name]
            w = w_ref[meta["row"]: meta["row"] + meta["kpad"], :]   # (kpad, 128)
            b = b_ref[meta["brow"]: meta["brow"] + 1, :]            # (1, 128)
            y = jnp.dot(x, w, preferred_element_type=jnp.float32) + b
            return jnp.maximum(y, 0.0) if act else y                # (rows, 128)

        def sample(ms, n, eps):
            loc = ms[:, :n]
            scale = _softplus(ms[:, n: 2 * n]) + EPS
            return loc + scale * eps

        data = data_ref[...]
        pos = data[:, dc["pos"][0]: dc["pos"][1]]
        eps_oa = data[:, dc["eps_oa"][0]: dc["eps_oa"][1]]
        eps_ot = data[:, dc["eps_ot"][0]: dc["eps_ot"][1]]
        eps_z = data[:, dc["eps_z"][0]: dc["eps_z"][1]]
        msgs = data[:, dc["msg"][0]: dc["msg"][1]]

        # --- pos_hidden layer 0 (K=2): two VPU broadcast FMAs, no MXU pass ---
        ph0 = L["ph0"]
        w0 = w_ref[ph0["row"]: ph0["row"] + 1, :]
        w1 = w_ref[ph0["row"] + 1: ph0["row"] + 2, :]
        b0 = b_ref[ph0["brow"]: ph0["brow"] + 1, :]
        h = jnp.maximum(pos[:, 0:1] * w0 + pos[:, 1:2] * w1 + b0, 0.0)

        # --- pos_hidden layer 1 ---
        ph_full = layer("ph1", h[:, : L["ph1"]["kpad"]], act=True)
        pos_hidden = ph_full[:, :h_pos]

        # --- fused obs_agents || obs_targets head ---
        ho = layer("o0", ph_full[:, : L["o0"]["kpad"]], act=True)
        o_ms = layer("o1", ho[:, : L["o1"]["kpad"]], act=False)
        obs_agents = sample(o_ms[:, : 2 * obs], obs, eps_oa)
        obs_targets = sample(o_ms[:, 2 * obs: 4 * obs], obs, eps_ot)

        # --- z head: Linear over concat([pos_hidden, obs_agents, obs_targets]) ---
        z_in = jnp.concatenate([pos_hidden, obs_agents, obs_targets], axis=-1)
        kz = L["z0"]["kpad"]
        if z_in.shape[-1] < kz:   # weight rows beyond K are zero, pad freely
            z_in = jnp.concatenate(
                [z_in, jnp.zeros((rows, kz - z_in.shape[-1]), jnp.float32)], axis=-1)
        hz = layer("z0", z_in, act=True)
        hz = layer("z1", hz[:, : L["z1"]["kpad"]], act=True)
        z_ms = layer("z2", hz[:, : L["z2"]["kpad"]], act=False)
        z = sample(z_ms[:, : 2 * zs], zs, eps_z)

        # --- message head: Linear over concat([obs_agents, obs_targets, pos, z]) ---
        m_in = jnp.concatenate([obs_agents, obs_targets, pos, z], axis=-1)
        km = L["m0"]["kpad"]
        if m_in.shape[-1] < km:
            m_in = jnp.concatenate(
                [m_in, jnp.zeros((rows, km - m_in.shape[-1]), jnp.float32)], axis=-1)
        hm = layer("m0", m_in, act=True)
        hm = layer("m1", hm[:, : L["m1"]["kpad"]], act=True)
        logits = layer("m2", hm[:, : L["m2"]["kpad"]], act=False)[:, :msg]

        message_mean = 1.0 / (1.0 + jnp.exp(-logits))
        # BCE-with-logits: sum(softplus(x) - m*x) == binary_cross_entropy(sigmoid(x), m)
        bce = jnp.sum(_softplus(logits) - msgs * logits, axis=-1, keepdims=True)

        # --- single lane-dense packed output (one unmasked writeback DMA) ---
        packed = jnp.concatenate(
            [obs_agents, obs_targets, z, message_mean, bce], axis=-1)
        pad = LANES - packed.shape[-1]
        out_ref[...] = jnp.concatenate(
            [packed, jnp.zeros((rows, pad), jnp.float32)], axis=-1)

    return kernel


# ----------------------------------------------------------------------------
# wrapper
# ----------------------------------------------------------------------------
def decoder_pallas(w_slab, b_slab, layout, pos, eps_oa, eps_ot, eps_z, messages,
                   row_block=512):
    R = pos.shape[0]
    data = jnp.concatenate(
        [pos, eps_oa, eps_ot, eps_z, messages], axis=-1).astype(jnp.float32)
    assert data.shape[1] == layout["data_w"]

    # row tiling: single block for small R, 512-row blocks (parallel grid) for large R
    rb = max(8, _round_up(R, 8)) if R <= row_block else row_block
    r_pad = _round_up(R, rb)
    if r_pad != R:
        data = jnp.concatenate(
            [data, jnp.zeros((r_pad - R, data.shape[1]), jnp.float32)], axis=0)

    out = pl.pallas_call(
        _make_kernel(layout, rb),
        out_shape=jax.ShapeDtypeStruct((r_pad, LANES), jnp.float32),
        grid_spec=pltpu.PrefetchScalarGridSpec(
            num_scalar_prefetch=0,
            grid=(r_pad // rb,),
            in_specs=[
                pl.BlockSpec((rb, layout["data_w"]), lambda i: (i, 0)),
                # constant index maps -> weight/bias slabs stay VMEM-resident
                pl.BlockSpec((layout["w_rows"], LANES), lambda i: (0, 0)),
                pl.BlockSpec((layout["b_rows"], LANES), lambda i: (0, 0)),
            ],
            out_specs=pl.BlockSpec((rb, LANES), lambda i: (i, 0)),
        ),
        compiler_params=pltpu.CompilerParams(
            dimension_semantics=("parallel",)),
    )(data, w_slab, b_slab)

    oc = layout["out_cols"]
    out = out[:R]
    oa = out[:, oc["oa"][0]: oc["oa"][1]]
    ot = out[:, oc["ot"][0]: oc["ot"][1]]
    z = out[:, oc["z"][0]: oc["z"][1]]
    mm = out[:, oc["mm"][0]: oc["mm"][1]]
    bce = out[:, oc["bce"][0]]
    return oa, ot, z, mm, bce


# ----------------------------------------------------------------------------
# pure-JAX reference mirroring the PyTorch forward (for validation)
# ----------------------------------------------------------------------------
def reference_forward(raw, pos, eps_oa, eps_ot, eps_z, messages):
    relu = lambda x: jnp.maximum(x, 0.0)
    sp = lambda x: jnp.maximum(x, 0.0) + jnp.log(1.0 + jnp.exp(-jnp.abs(x)))
    lin = lambda x, p: x @ p[0] + p[1]

    def sample(ms, eps):
        n = ms.shape[-1] // 2
        return ms[:, :n] + (sp(ms[:, n:]) + EPS) * eps

    ph = relu(lin(relu(lin(pos, raw["ph0"])), raw["ph1"]))
    ot = sample(lin(relu(lin(ph, raw["ot0"])), raw["ot1"]), eps_ot)
    oa = sample(lin(relu(lin(ph, raw["oa0"])), raw["oa1"]), eps_oa)
    h = relu(lin(jnp.concatenate([ph, oa, ot], -1), raw["z0"]))
    h = relu(lin(h, raw["z1"]))
    z = sample(lin(h, raw["z2"]), eps_z)
    h = relu(lin(jnp.concatenate([oa, ot, pos, z], -1), raw["m0"]))
    h = relu(lin(h, raw["m1"]))
    mm = jax.nn.sigmoid(lin(h, raw["m2"]))
    bce = -(jnp.log(mm + EPS) * messages
            + jnp.log(1.0 - mm + EPS) * (1.0 - messages)).sum(-1)
    return oa, ot, z, mm, bce


if __name__ == "__main__":
    # small shapes consistent with the module
    S, B = 2, 8               # num_samples, batch_size
    OBS, ZS, MSG = 4, 4, 8    # obs_size, z_size, message_size
    H_POS = H_Z = H_OBS = H_MSG = 16
    R = S * B

    key = jax.random.PRNGKey(0)
    k_param, k_pos, k_oa, k_ot, k_z, k_msg = jax.random.split(key, 6)

    layout = make_layout(OBS, ZS, MSG, H_POS, H_Z, H_OBS, H_MSG)
    raw = build_raw_params(k_param, OBS, ZS, MSG, H_POS, H_Z, H_OBS, H_MSG)
    w_slab, b_slab = pack_params(layout, raw)

    # pos ~ N(0,1) prior sample (q is None); reparameterization noise for the rest
    pos = jax.random.normal(k_pos, (S, B, 2), jnp.float32)
    eps_oa = jax.random.normal(k_oa, (S, B, OBS), jnp.float32)
    eps_ot = jax.random.normal(k_ot, (S, B, OBS), jnp.float32)
    eps_z = jax.random.normal(k_z, (S, B, ZS), jnp.float32)
    messages = (jax.random.uniform(k_msg, (S, B, MSG)) > 0.5).astype(jnp.float32)

    # flatten (S, B, F) -> (S*B, F)
    pos2 = pos.reshape(R, 2)
    eps_oa2 = eps_oa.reshape(R, OBS)
    eps_ot2 = eps_ot.reshape(R, OBS)
    eps_z2 = eps_z.reshape(R, ZS)
    msgs2 = messages.reshape(R, MSG)

    oa, ot, z, mm, bce = decoder_pallas(
        w_slab, b_slab, layout, pos2, eps_oa2, eps_ot2, eps_z2, msgs2)

    # trace-style outputs + the module's second return value: mean over samples
    message_mean_avg = jnp.mean(mm.reshape(S, B, MSG), axis=0)
    bce_loss = bce.reshape(S, B)
    jax.block_until_ready((oa, ot, z, mm, message_mean_avg, bce_loss))

    # validate against pure-JAX reference
    oa_r, ot_r, z_r, mm_r, bce_r = reference_forward(
        raw, pos2, eps_oa2, eps_ot2, eps_z2, msgs2)
    assert jnp.allclose(oa, oa_r, atol=1e-4, rtol=1e-4)
    assert jnp.allclose(ot, ot_r, atol=1e-4, rtol=1e-4)
    assert jnp.allclose(z, z_r, atol=1e-4, rtol=1e-4)
    assert jnp.allclose(mm, mm_r, atol=1e-4, rtol=1e-4)
    assert jnp.allclose(bce, bce_r, atol=1e-4, rtol=1e-4)

    # TODO(synk): probtorch.Trace log-prob bookkeeping (p.normal entries) has no
    # Pallas equivalent; the kernel returns the sampled latents instead.
    print("KERNEL_OK")
</pallas_src>

<mosaic_0001>
module attributes {stable_mosaic.version = 11 : i64} {
  func.func @kernel(%arg0: i32, %arg1: memref<16x22xf32, #tpu.memory_space<vmem>>, %arg2: memref<256x128xf32, #tpu.memory_space<vmem>>, %arg3: memref<16x128xf32, #tpu.memory_space<vmem>>, %arg4: memref<16x128xf32, #tpu.memory_space<vmem>>) attributes {dimension_semantics = [#tpu.dimension_semantics<parallel>], iteration_bounds = array<i64: 1>, scalar_prefetch = 0 : i64, scratch_operands = 0 : i64, tpu.core_type = #tpu.core_type<tc>, window_params = [{transform_indices = @transform_0, window_bounds = array<i64: 16, 22>}, {pipeline_mode = #tpu.pipeline_mode<synchronous>, transform_indices = @transform_1, window_bounds = array<i64: 256, 128>}, {pipeline_mode = #tpu.pipeline_mode<synchronous>, transform_indices = @transform_2, window_bounds = array<i64: 16, 128>}, {transform_indices = @transform_3, window_bounds = array<i64: 16, 128>}]} {
    %c0 = arith.constant 0 : index
    %c0_0 = arith.constant 0 : index
    %0 = vector.load %arg1[%c0, %c0_0] : memref<16x22xf32, #tpu.memory_space<vmem>>, vector<16x22xf32>
    %1 = vector.extract_strided_slice %0 {offsets = [0, 0], sizes = [16, 2], strides = [1, 1]} : vector<16x22xf32> to vector<16x2xf32>
    %2 = vector.extract_strided_slice %0 {offsets = [0, 2], sizes = [16, 4], strides = [1, 1]} : vector<16x22xf32> to vector<16x4xf32>
    %3 = vector.extract_strided_slice %0 {offsets = [0, 6], sizes = [16, 4], strides = [1, 1]} : vector<16x22xf32> to vector<16x4xf32>
    %4 = vector.extract_strided_slice %0 {offsets = [0, 10], sizes = [16, 4], strides = [1, 1]} : vector<16x22xf32> to vector<16x4xf32>
    %5 = vector.extract_strided_slice %0 {offsets = [0, 14], sizes = [16, 8], strides = [1, 1]} : vector<16x22xf32> to vector<16x8xf32>
    %c0_1 = arith.constant 0 : index
    %c0_2 = arith.constant 0 : index
    %6 = vector.load %arg2[%c0_1, %c0_2] : memref<256x128xf32, #tpu.memory_space<vmem>>, vector<1x128xf32>
    %c1 = arith.constant 1 : index
    %c0_3 = arith.constant 0 : index
    %7 = vector.load %arg2[%c1, %c0_3] : memref<256x128xf32, #tpu.memory_space<vmem>>, vector<1x128xf32>
    %c0_4 = arith.constant 0 : index
    %c0_5 = arith.constant 0 : index
    %8 = vector.load %arg3[%c0_4, %c0_5] : memref<16x128xf32, #tpu.memory_space<vmem>>, vector<1x128xf32>
    %9 = vector.extract_strided_slice %1 {offsets = [0, 0], sizes = [16, 1], strides = [1, 1]} : vector<16x2xf32> to vector<16x1xf32>
    %10 = vector.broadcast %9 : vector<16x1xf32> to vector<16x128xf32>
    %11 = vector.broadcast %6 : vector<1x128xf32> to vector<16x128xf32>
    %12 = arith.mulf %10, %11 : vector<16x128xf32>
    %13 = vector.extract_strided_slice %1 {offsets = [0, 1], sizes = [16, 1], strides = [1, 1]} : vector<16x2xf32> to vector<16x1xf32>
    %14 = vector.broadcast %13 : vector<16x1xf32> to vector<16x128xf32>
    %15 = vector.broadcast %7 : vector<1x128xf32> to vector<16x128xf32>
    %16 = arith.mulf %14, %15 : vector<16x128xf32>
    %17 = arith.addf %12, %16 : vector<16x128xf32>
    %18 = vector.broadcast %8 : vector<1x128xf32> to vector<16x128xf32>
    %19 = arith.addf %17, %18 : vector<16x128xf32>
    %cst = arith.constant 0.000000e+00 : f32
    %20 = vector.broadcast %cst : f32 to vector<16x128xf32>
    %21 = arith.maximumf %19, %20 : vector<16x128xf32>
    %22 = vector.extract_strided_slice %21 {offsets = [0, 0], sizes = [16, 32], strides = [1, 1]} : vector<16x128xf32> to vector<16x32xf32>
    %c8 = arith.constant 8 : index
    %c0_6 = arith.constant 0 : index
    %23 = vector.load %arg2[%c8, %c0_6] : memref<256x128xf32, #tpu.memory_space<vmem>>, vector<32x128xf32>
    %c1_7 = arith.constant 1 : index
    %c0_8 = arith.constant 0 : index
    %24 = vector.load %arg3[%c1_7, %c0_8] : memref<16x128xf32, #tpu.memory_space<vmem>>, vector<1x128xf32>
    %cst_9 = arith.constant dense<0.000000e+00> : vector<16x128xf32>
    %25 = tpu.matmul %22, %23, %cst_9 {dimension_numbers = #tpu.dot_dimension_numbers<[1], [0], [0], [1], [0, 0, 1, 1], [], []>} : vector<16x32xf32>, vector<32x128xf32>, vector<16x128xf32> -> vector<16x128xf32>
    %26 = vector.broadcast %24 : vector<1x128xf32> to vector<16x128xf32>
    %27 = arith.addf %25, %26 : vector<16x128xf32>
    %cst_10 = arith.constant 0.000000e+00 : f32
    %28 = vector.broadcast %cst_10 : f32 to vector<16x128xf32>
    %29 = arith.maximumf %27, %28 : vector<16x128xf32>
    %30 = vector.extract_strided_slice %29 {offsets = [0, 0], sizes = [16, 16], strides = [1, 1]} : vector<16x128xf32> to vector<16x16xf32>
    %31 = vector.extract_strided_slice %29 {offsets = [0, 0], sizes = [16, 16], strides = [1, 1]} : vector<16x128xf32> to vector<16x16xf32>
    %c40 = arith.constant 40 : index
    %c0_11 = arith.constant 0 : index
    %32 = vector.load %arg2[%c40, %c0_11] : memref<256x128xf32, #tpu.memory_space<vmem>>, vector<16x128xf32>
    %c2 = arith.constant 2 : index
    %c0_12 = arith.constant 0 : index
    %33 = vector.load %arg3[%c2, %c0_12] : memref<16x128xf32, #tpu.memory_space<vmem>>, vector<1x128xf32>
    %cst_13 = arith.constant dense<0.000000e+00> : vector<16x128xf32>
    %34 = tpu.matmul %31, %32, %cst_13 {dimension_numbers = #tpu.dot_dimension_numbers<[1], [0], [0], [1], [0, 0, 1, 1], [], []>} : vector<16x16xf32>, vector<16x128xf32>, vector<16x128xf32> -> vector<16x128xf32>
    %35 = vector.broadcast %33 : vector<1x128xf32> to vector<16x128xf32>
    %36 = arith.addf %34, %35 : vector<16x128xf32>
    %cst_14 = arith.constant 0.000000e+00 : f32
    %37 = vector.broadcast %cst_14 : f32 to vector<16x128xf32>
    %38 = arith.maximumf %36, %37 : vector<16x128xf32>
    %39 = vector.extract_strided_slice %38 {offsets = [0, 0], sizes = [16, 64], strides = [1, 1]} : vector<16x128xf32> to vector<16x64xf32>
    %c56 = arith.constant 56 : index
    %c0_15 = arith.constant 0 : index
    %40 = vector.load %arg2[%c56, %c0_15] : memref<256x128xf32, #tpu.memory_space<vmem>>, vector<64x128xf32>
    %c3 = arith.constant 3 : index
    %c0_16 = arith.constant 0 : index
    %41 = vector.load %arg3[%c3, %c0_16] : memref<16x128xf32, #tpu.memory_space<vmem>>, vector<1x128xf32>
    %cst_17 = arith.constant dense<0.000000e+00> : vector<16x128xf32>
    %42 = tpu.matmul %39, %40, %cst_17 {dimension_numbers = #tpu.dot_dimension_numbers<[1], [0], [0], [1], [0, 0, 1, 1], [], []>} : vector<16x64xf32>, vector<64x128xf32>, vector<16x128xf32> -> vector<16x128xf32>
    %43 = vector.broadcast %41 : vector<1x128xf32> to vector<16x128xf32>
    %44 = arith.addf %42, %43 : vector<16x128xf32>
    %45 = vector.extract_strided_slice %44 {offsets = [0, 0], sizes = [16, 8], strides = [1, 1]} : vector<16x128xf32> to vector<16x8xf32>
    %46 = vector.extract_strided_slice %45 {offsets = [0, 0], sizes = [16, 4], strides = [1, 1]} : vector<16x8xf32> to vector<16x4xf32>
    %47 = vector.extract_strided_slice %45 {offsets = [0, 4], sizes = [16, 4], strides = [1, 1]} : vector<16x8xf32> to vector<16x4xf32>
    %cst_18 = arith.constant 0.000000e+00 : f32
    %48 = vector.broadcast %cst_18 : f32 to vector<16x4xf32>
    %49 = arith.maximumf %47, %48 : vector<16x4xf32>
    %50 = math.absf %47 : vector<16x4xf32>
    %cst_19 = arith.constant 0.000000e+00 : f32
    %51 = vector.broadcast %cst_19 : f32 to vector<16x4xf32>
    %52 = arith.subf %51, %50 : vector<16x4xf32>
    %53 = math.exp %52 : vector<16x4xf32>
    %cst_20 = arith.constant 1.000000e+00 : f32
    %54 = vector.broadcast %cst_20 : f32 to vector<16x4xf32>
    %55 = arith.addf %54, %53 : vector<16x4xf32>
    %56 = math.log %55 : vector<16x4xf32>
    %57 = arith.addf %49, %56 : vector<16x4xf32>
    %cst_21 = arith.constant 9.99999971E-10 : f32
    %58 = vector.broadcast %cst_21 : f32 to vector<16x4xf32>
    %59 = arith.addf %57, %58 : vector<16x4xf32>
    %60 = arith.mulf %59, %2 : vector<16x4xf32>
    %61 = arith.addf %46, %60 : vector<16x4xf32>
    %62 = vector.extract_strided_slice %44 {offsets = [0, 8], sizes = [16, 8], strides = [1, 1]} : vector<16x128xf32> to vector<16x8xf32>
    %63 = vector.extract_strided_slice %62 {offsets = [0, 0], sizes = [16, 4], strides = [1, 1]} : vector<16x8xf32> to vector<16x4xf32>
    %64 = vector.extract_strided_slice %62 {offsets = [0, 4], sizes = [16, 4], strides = [1, 1]} : vector<16x8xf32> to vector<16x4xf32>
    %cst_22 = arith.constant 0.000000e+00 : f32
    %65 = vector.broadcast %cst_22 : f32 to vector<16x4xf32>
    %66 = arith.maximumf %64, %65 : vector<16x4xf32>
    %67 = math.absf %64 : vector<16x4xf32>
    %cst_23 = arith.constant 0.000000e+00 : f32
    %68 = vector.broadcast %cst_23 : f32 to vector<16x4xf32>
    %69 = arith.subf %68, %67 : vector<16x4xf32>
    %70 = math.exp %69 : vector<16x4xf32>
    %cst_24 = arith.constant 1.000000e+00 : f32
    %71 = vector.broadcast %cst_24 : f32 to vector<16x4xf32>
    %72 = arith.addf %71, %70 : vector<16x4xf32>
    %73 = math.log %72 : vector<16x4xf32>
    %74 = arith.addf %66, %73 : vector<16x4xf32>
    %cst_25 = arith.constant 9.99999971E-10 : f32
    %75 = vector.broadcast %cst_25 : f32 to vector<16x4xf32>
    %76 = arith.addf %74, %75 : vector<16x4xf32>
    %77 = arith.mulf %76, %3 : vector<16x4xf32>
    %78 = arith.addf %63, %77 : vector<16x4xf32>
    %79 = tpu.concatenate %30, %61, %78 in 1 : vector<16x16xf32>, vector<16x4xf32>, vector<16x4xf32> -> vector<16x24xf32>
    %c120 = arith.constant 120 : index
    %c0_26 = arith.constant 0 : index
    %80 = vector.load %arg2[%c120, %c0_26] : memref<256x128xf32, #tpu.memory_space<vmem>>, vector<24x128xf32>
    %c4 = arith.constant 4 : index
    %c0_27 = arith.constant 0 : index
    %81 = vector.load %arg3[%c4, %c0_27] : memref<16x128xf32, #tpu.memory_space<vmem>>, vector<1x128xf32>
    %cst_28 = arith.constant dense<0.000000e+00> : vector<16x128xf32>
    %82 = tpu.matmul %79, %80, %cst_28 {dimension_numbers = #tpu.dot_dimension_numbers<[1], [0], [0], [1], [0, 0, 1, 1], [], []>} : vector<16x24xf32>, vector<24x128xf32>, vector<16x128xf32> -> vector<16x128xf32>
    %83 = vector.broadcast %81 : vector<1x128xf32> to vector<16x128xf32>
    %84 = arith.addf %82, %83 : vector<16x128xf32>
    %cst_29 = arith.constant 0.000000e+00 : f32
    %85 = vector.broadcast %cst_29 : f32 to vector<16x128xf32>
    %86 = arith.maximumf %84, %85 : vector<16x128xf32>
    %87 = vector.extract_strided_slice %86 {offsets = [0, 0], sizes = [16, 32], strides = [1, 1]} : vector<16x128xf32> to vector<16x32xf32>
    %c144 = arith.constant 144 : index
    %c0_30 = arith.constant 0 : index
    %88 = vector.load %arg2[%c144, %c0_30] : memref<256x128xf32, #tpu.memory_space<vmem>>, vector<32x128xf32>
    %c5 = arith.constant 5 : index
    %c0_31 = arith.constant 0 : index
    %89 = vector.load %arg3[%c5, %c0_31] : memref<16x128xf32, #tpu.memory_space<vmem>>, vector<1x128xf32>
    %cst_32 = arith.constant dense<0.000000e+00> : vector<16x128xf32>
    %90 = tpu.matmul %87, %88, %cst_32 {dimension_numbers = #tpu.dot_dimension_numbers<[1], [0], [0], [1], [0, 0, 1, 1], [], []>} : vector<16x32xf32>, vector<32x128xf32>, vector<16x128xf32> -> vector<16x128xf32>
    %91 = vector.broadcast %89 : vector<1x128xf32> to vector<16x128xf32>
    %92 = arith.addf %90, %91 : vector<16x128xf32>
    %cst_33 = arith.constant 0.000000e+00 : f32
    %93 = vector.broadcast %cst_33 : f32 to vector<16x128xf32>
    %94 = arith.maximumf %92, %93 : vector<16x128xf32>
    %95 = vector.extract_strided_slice %94 {offsets = [0, 0], sizes = [16, 16], strides = [1, 1]} : vector<16x128xf32> to vector<16x16xf32>
    %c176 = arith.constant 176 : index
    %c0_34 = arith.constant 0 : index
    %96 = vector.load %arg2[%c176, %c0_34] : memref<256x128xf32, #tpu.memory_space<vmem>>, vector<16x128xf32>
    %c6 = arith.constant 6 : index
    %c0_35 = arith.constant 0 : index
    %97 = vector.load %arg3[%c6, %c0_35] : memref<16x128xf32, #tpu.memory_space<vmem>>, vector<1x128xf32>
    %cst_36 = arith.constant dense<0.000000e+00> : vector<16x128xf32>
    %98 = tpu.matmul %95, %96, %cst_36 {dimension_numbers = #tpu.dot_dimension_numbers<[1], [0], [0], [1], [0, 0, 1, 1], [], []>} : vector<16x16xf32>, vector<16x128xf32>, vector<16x128xf32> -> vector<16x128xf32>
    %99 = vector.broadcast %97 : vector<1x128xf32> to vector<16x128xf32>
    %100 = arith.addf %98, %99 : vector<16x128xf32>
    %101 = vector.extract_strided_slice %100 {offsets = [0, 0], sizes = [16, 8], strides = [1, 1]} : vector<16x128xf32> to vector<16x8xf32>
    %102 = vector.extract_strided_slice %101 {offsets = [0, 0], sizes = [16, 4], strides = [1, 1]} : vector<16x8xf32> to vector<16x4xf32>
    %103 = vector.extract_strided_slice %101 {offsets = [0, 4], sizes = [16, 4], strides = [1, 1]} : vector<16x8xf32> to vector<16x4xf32>
    %cst_37 = arith.constant 0.000000e+00 : f32
    %104 = vector.broadcast %cst_37 : f32 to vector<16x4xf32>
    %105 = arith.maximumf %103, %104 : vector<16x4xf32>
    %106 = math.absf %103 : vector<16x4xf32>
    %cst_38 = arith.constant 0.000000e+00 : f32
    %107 = vector.broadcast %cst_38 : f32 to vector<16x4xf32>
    %108 = arith.subf %107, %106 : vector<16x4xf32>
    %109 = math.exp %108 : vector<16x4xf32>
    %cst_39 = arith.constant 1.000000e+00 : f32
    %110 = vector.broadcast %cst_39 : f32 to vector<16x4xf32>
    %111 = arith.addf %110, %109 : vector<16x4xf32>
    %112 = math.log %111 : vector<16x4xf32>
    %113 = arith.addf %105, %112 : vector<16x4xf32>
    %cst_40 = arith.constant 9.99999971E-10 : f32
    %114 = vector.broadcast %cst_40 : f32 to vector<16x4xf32>
    %115 = arith.addf %113, %114 : vector<16x4xf32>
    %116 = arith.mulf %115, %4 : vector<16x4xf32>
    %117 = arith.addf %102, %116 : vector<16x4xf32>
    %118 = tpu.concatenate %61, %78, %1, %117 in 1 : vector<16x4xf32>, vector<16x4xf32>, vector<16x2xf32>, vector<16x4xf32> -> vector<16x14xf32>
    %cst_41 = arith.constant 0.000000e+00 : f32
    %119 = vector.broadcast %cst_41 : f32 to vector<16x2xf32>
    %120 = tpu.concatenate %118, %119 in 1 : vector<16x14xf32>, vector<16x2xf32> -> vector<16x16xf32>
    %c192 = arith.constant 192 : index
    %c0_42 = arith.constant 0 : index
    %121 = vector.load %arg2[%c192, %c0_42] : memref<256x128xf32, #tpu.memory_space<vmem>>, vector<16x128xf32>
    %c7 = arith.constant 7 : index
    %c0_43 = arith.constant 0 : index
    %122 = vector.load %arg3[%c7, %c0_43] : memref<16x128xf32, #tpu.memory_space<vmem>>, vector<1x128xf32>
    %cst_44 = arith.constant dense<0.000000e+00> : vector<16x128xf32>
    %123 = tpu.matmul %120, %121, %cst_44 {dimension_numbers = #tpu.dot_dimension_numbers<[1], [0], [0], [1], [0, 0, 1, 1], [], []>} : vector<16x16xf32>, vector<16x128xf32>, vector<16x128xf32> -> vector<16x128xf32>
    %124 = vector.broadcast %122 : vector<1x128xf32> to vector<16x128xf32>
    %125 = arith.addf %123, %124 : vector<16x128xf32>
    %cst_45 = arith.constant 0.000000e+00 : f32
    %126 = vector.broadcast %cst_45 : f32 to vector<16x128xf32>
    %127 = arith.maximumf %125, %126 : vector<16x128xf32>
    %128 = vector.extract_strided_slice %127 {offsets = [0, 0], sizes = [16, 32], strides = [1, 1]} : vector<16x128xf32> to vector<16x32xf32>
    %c208 = arith.constant 208 : index
    %c0_46 = arith.constant 0 : index
    %129 = vector.load %arg2[%c208, %c0_46] : memref<256x128xf32, #tpu.memory_space<vmem>>, vector<32x128xf32>
    %c8_47 = arith.constant 8 : index
    %c0_48 = arith.constant 0 : index
    %130 = vector.load %arg3[%c8_47, %c0_48] : memref<16x128xf32, #tpu.memory_space<vmem>>, vector<1x128xf32>
    %cst_49 = arith.constant dense<0.000000e+00> : vector<16x128xf32>
    %131 = tpu.matmul %128, %129, %cst_49 {dimension_numbers = #tpu.dot_dimension_numbers<[1], [0], [0], [1], [0, 0, 1, 1], [], []>} : vector<16x32xf32>, vector<32x128xf32>, vector<16x128xf32> -> vector<16x128xf32>
    %132 = vector.broadcast %130 : vector<1x128xf32> to vector<16x128xf32>
    %133 = arith.addf %131, %132 : vector<16x128xf32>
    %cst_50 = arith.constant 0.000000e+00 : f32
    %134 = vector.broadcast %cst_50 : f32 to vector<16x128xf32>
    %135 = arith.maximumf %133, %134 : vector<16x128xf32>
    %136 = vector.extract_strided_slice %135 {offsets = [0, 0], sizes = [16, 16], strides = [1, 1]} : vector<16x128xf32> to vector<16x16xf32>
    %c240 = arith.constant 240 : index
    %c0_51 = arith.constant 0 : index
    %137 = vector.load %arg2[%c240, %c0_51] : memref<256x128xf32, #tpu.memory_space<vmem>>, vector<16x128xf32>
    %c9 = arith.constant 9 : index
    %c0_52 = arith.constant 0 : index
    %138 = vector.load %arg3[%c9, %c0_52] : memref<16x128xf32, #tpu.memory_space<vmem>>, vector<1x128xf32>
    %cst_53 = arith.constant dense<0.000000e+00> : vector<16x128xf32>
    %139 = tpu.matmul %136, %137, %cst_53 {dimension_numbers = #tpu.dot_dimension_numbers<[1], [0], [0], [1], [0, 0, 1, 1], [], []>} : vector<16x16xf32>, vector<16x128xf32>, vector<16x128xf32> -> vector<16x128xf32>
    %140 = vector.broadcast %138 : vector<1x128xf32> to vector<16x128xf32>
    %141 = arith.addf %139, %140 : vector<16x128xf32>
    %142 = vector.extract_strided_slice %141 {offsets = [0, 0], sizes = [16, 8], strides = [1, 1]} : vector<16x128xf32> to vector<16x8xf32>
    %cst_54 = arith.constant 0.000000e+00 : f32
    %143 = vector.broadcast %cst_54 : f32 to vector<16x8xf32>
    %144 = arith.subf %143, %142 : vector<16x8xf32>
    %145 = math.exp %144 : vector<16x8xf32>
    %cst_55 = arith.constant 1.000000e+00 : f32
    %146 = vector.broadcast %cst_55 : f32 to vector<16x8xf32>
    %147 = arith.addf %146, %145 : vector<16x8xf32>
    %cst_56 = arith.constant 1.000000e+00 : f32
    %148 = vector.broadcast %cst_56 : f32 to vector<16x8xf32>
    %149 = arith.divf %148, %147 : vector<16x8xf32>
    %cst_57 = arith.constant 0.000000e+00 : f32
    %150 = vector.broadcast %cst_57 : f32 to vector<16x8xf32>
    %151 = arith.maximumf %142, %150 : vector<16x8xf32>
    %152 = math.absf %142 : vector<16x8xf32>
    %cst_58 = arith.constant 0.000000e+00 : f32
    %153 = vector.broadcast %cst_58 : f32 to vector<16x8xf32>
    %154 = arith.subf %153, %152 : vector<16x8xf32>
    %155 = math.exp %154 : vector<16x8xf32>
    %cst_59 = arith.constant 1.000000e+00 : f32
    %156 = vector.broadcast %cst_59 : f32 to vector<16x8xf32>
    %157 = arith.addf %156, %155 : vector<16x8xf32>
    %158 = math.log %157 : vector<16x8xf32>
    %159 = arith.addf %151, %158 : vector<16x8xf32>
    %160 = arith.mulf %5, %142 : vector<16x8xf32>
    %161 = arith.subf %159, %160 : vector<16x8xf32>
    %cst_60 = arith.constant dense<0.000000e+00> : vector<16xf32>
    %162 = vector.multi_reduction <add>, %161, %cst_60 [1] : vector<16x8xf32> to vector<16xf32>
    %163 = vector.shape_cast %162 : vector<16xf32> to vector<16x1xf32>
    %164 = tpu.concatenate %61, %78, %117, %149, %163 in 1 : vector<16x4xf32>, vector<16x4xf32>, vector<16x4xf32>, vector<16x8xf32>, vector<16x1xf32> -> vector<16x21xf32>
    %cst_61 = arith.constant 0.000000e+00 : f32
    %165 = vector.broadcast %cst_61 : f32 to vector<16x107xf32>
    %166 = tpu.concatenate %164, %165 in 1 : vector<16x21xf32>, vector<16x107xf32> -> vector<16x128xf32>
    %c0_62 = arith.constant 0 : index
    %c0_63 = arith.constant 0 : index
    %167 = vector.load %arg4[%c0_62, %c0_63] : memref<16x128xf32, #tpu.memory_space<vmem>>, vector<16x128xf32>
    tpu.vector_store %arg4[%c0_62, %c0_63], %166 {strides = array<i32>} : memref<16x128xf32, #tpu.memory_space<vmem>>, vector<16x128xf32>,
    return
  }
  func.func @transform_0(%arg0: i32) -> (i32, i32) {
    %c0_i32 = arith.constant 0 : i32
    %c0_i32_0 = arith.constant 0 : i32
    return %arg0, %c0_i32 : i32, i32
  }
  func.func @transform_1(%arg0: i32) -> (i32, i32) {
    %c0_i32 = arith.constant 0 : i32
    %c0_i32_0 = arith.constant 0 : i32
    %c0_i32_1 = arith.constant 0 : i32
    return %c0_i32, %c0_i32_0 : i32, i32
  }
  func.func @transform_2(%arg0: i32) -> (i32, i32) {
    %c0_i32 = arith.constant 0 : i32
    %c0_i32_0 = arith.constant 0 : i32
    %c0_i32_1 = arith.constant 0 : i32
    return %c0_i32, %c0_i32_0 : i32, i32
  }
  func.func @transform_3(%arg0: i32) -> (i32, i32) {
    %c0_i32 = arith.constant 0 : i32
    %c0_i32_0 = arith.constant 0 : i32
    return %arg0, %c0_i32 : i32, i32
  }
}

</mosaic_0001>

<bundles_post_ra>
// kernel: tpu_custom_call.1
= control target key start
LH: loop header
LB: loop body
LE: loop exit
PB: predicated region body
PF: predicated region fallthrough
CT: control target
= control target key end

     0   :  { %8 = vsyncpa [#allocation3], 0  ;;  %s1754_s0 = inlined_call_operand.hbm [shape: f32[16,22], index: 0, kind: input, shape index: {}]   ;;  %s1755_s1 = inlined_call_operand.hbm [shape: f32[256,128], index: 1, kind: input, shape index: {}]   ;;  %s1756_s2 = inlined_call_operand.hbm [shape: f32[16,128], index: 2, kind: input, shape index: {}]   ;;  %s1757_s3 = inlined_call_operand.hbm [shape: f32[16,128], index: 3, kind: output, shape index: {}]  }
   0x1   :  { %9 = vsyncpa [#allocation6], 0 }
   0x2   :  { %10 = vsyncpa [#allocation4], 0  ;;  %s1544_s12 = smov [#allocation5]   ;;  %s1545_s14 = smov [#allocation2]  }
   0x3   :  { %s28_s13 = sshll.u32 %s1544_s12, 4  ;;  %s16_s15 = sshll.u32 %s1545_s14, 4  ;;  %s29_s13 = int_to_ptr.vmem [resolvable:$true] %s28_s13  ;;  %s1581_s15 = int_to_ptr.vmem [resolvable:$true] %s16_s15 }
   0x4   :  { %s1450_s18 = scalar_lea.hbm %s1755_s1, 4096 }
   0x5   :  { %p1451_p0 = scmp.ne.s32.totalorder %s1755_s1, %s1450_s18  ;;  %p1454_p1 = scmp.lt.u32.totalorder %s1450_s18, %s1755_s1 }
   0x7   :  { %p1456_p2 = pnand %p1454_p1, %p1451_p0 }
   0x9   :  { %1459 = shalt.err (!%p1456_p2)
}
   0xa   :  { %s1460_s23 = scalar_lea.vmem %s29_s13, 4096  ;;  %p1465_p4 = scmp.lt.s32.totalorder %s29_s13, %s29_s13 }
   0xb   :  { %p1461_p3 = scmp.ne.s32.totalorder %s29_s13, %s1460_s23  ;;  %p1466_p5 = scmp.lt.s32.totalorder %s1460_s23, %s1460_s23 }
   0xd   :  { %p1467_p6 = por %p1466_p5, %p1465_p4 }
   0xf   :  { %p1468_p7 = pnand %p1467_p6, %p1461_p3 }
  0x11   :  { %1471 = shalt.err (!%p1468_p7)
}
  0x12   :  { %s1546_s24 = smov 128   ;;  %s1547_s25 = smov 8  }
  0x13   :  { %34 = dma.hbm_to_vmem [thread:$0]  %s1755_s1, 4096, %s29_s13, [#allocation6], %s1546_s24, %s1546_s24, %s1547_s25  }
  0x14   :  { %s1472_s30 = scalar_lea.hbm %s1754_s0, 256 }
  0x15   :  { %p1473_p8 = scmp.ne.s32.totalorder %s1754_s0, %s1472_s30  ;;  %p1476_p9 = scmp.lt.u32.totalorder %s1472_s30, %s1754_s0 }
  0x17   :  { %p1478_p10 = pnand %p1476_p9, %p1473_p8 }
  0x19   :  { %1481 = shalt.err (!%p1478_p10)
}
  0x1a   :  { %s1482_s8 = scalar_lea.vmem %s1581_s15, 256  ;;  %p1487_p12 = scmp.lt.s32.totalorder %s1581_s15, %s1581_s15 }
  0x1b   :  { %p1483_p11 = scmp.ne.s32.totalorder %s1581_s15, %s1482_s8  ;;  %p1488_p13 = scmp.lt.s32.totalorder %s1482_s8, %s1482_s8 }
  0x1d   :  { %p1489_p0 = por %p1488_p13, %p1487_p12 }
  0x1f   :  { %p1490_p1 = pnand %p1489_p0, %p1483_p11 }
  0x21   :  { %1493 = shalt.err (!%p1490_p1)
}
  0x22   :  { %22 = dma.hbm_to_vmem [thread:$0]  %s1754_s0, 256, %s1581_s15, [#allocation3], %s1546_s24, %s1546_s24, %s1547_s25  }
  0x23   :  { %s1548_s10 = smov [#allocation7]   ;;  %s1494_s14 = scalar_lea.hbm %s1756_s2, 256 }
  0x24   :  { %s40_s11 = sshll.u32 %s1548_s10, 4  ;;  %p1495_p2 = scmp.ne.s32.totalorder %s1756_s2, %s1494_s14  ;;  %s41_s11 = int_to_ptr.vmem [resolvable:$true] %s40_s11 }
  0x25   :  { %p1498_p3 = scmp.lt.u32.totalorder %s1494_s14, %s1756_s2 }
  0x27   :  { %p1500_p4 = pnand %p1498_p3, %p1495_p2 }
  0x29   :  { %1503 = shalt.err (!%p1500_p4)
}
  0x2a   :  { %s1504_s20 = scalar_lea.vmem %s41_s11, 256  ;;  %p1509_p6 = scmp.lt.s32.totalorder %s41_s11, %s41_s11 }
  0x2b   :  { %p1505_p5 = scmp.ne.s32.totalorder %s41_s11, %s1504_s20  ;;  %p1510_p7 = scmp.lt.s32.totalorder %s1504_s20, %s1504_s20 }
  0x2d   :  { %p1511_p8 = por %p1510_p7, %p1509_p6 }
  0x2f   :  { %p1512_p9 = pnand %p1511_p8, %p1505_p5 }
  0x31   :  { %1515 = shalt.err (!%p1512_p9)
}
  0x32   :  { %46 = dma.hbm_to_vmem [thread:$0]  %s1756_s2, 256, %s41_s11, [#allocation6], %s1546_s24, %s1546_s24, %s1547_s25  }
  0x33   :  { %1538 = dma.done.wait [#allocation3], 256  }
  0x34   :  { %1539 = vsyncadd [#allocation3], 4294967040 }
  0x35   :  { %1540 = dma.done.wait [#allocation6], 4352  }
  0x36   :  { %1541 = vsyncadd [#allocation6], 4294962944  ;;  %v1549_v0 = vmov 0   ;;  %v1633_v1 = vld [vmem:[#allocation2 + $0x8] sm:$0xff]  ;;  %v1635_v2 = vld [vmem:[#allocation2] sm:$0xff]  ;;  %v1550_v5 = vmov 1  }
  0x37   :  { %1416 = vset.pattern.permute.xlu1 %v1549_v0  ;;  %1414 = vset.pattern.permute.xlu0 %v1549_v0  ;;  %v101_v3 = vld [vmem:[#allocation5 + $0x8] sm:$0xff]  ;;  %v102_v4 = vld [vmem:[#allocation5 + $0x10] sm:$0xff]  ;;  %v103_v7 = vld [vmem:[#allocation5 + $0x18] sm:$0xff]  ;;  %vm110_vm0 = vcmask 261120   ;;  %vm201_vm1 = vcmask 130048   ;;  %s1551_s2 = smov 2  }
  0x38   :  { %68 = vperm.xlu1 %1416, %v1633_v1   ;;  %63 = vperm.xlu0 %1414, %v1635_v2   ;;  %v1337_v6 = vpack.c.bf16 %v102_v4, %v101_v3  ;;  %v104_v8 = vld [vmem:[#allocation5 + $0x20] sm:$0xff]  ;;  %v194_v27 = vld [vmem:[#allocation5 + $0x28] sm:$0xff]  ;;  %v195_v28 = vld [vmem:[#allocation5 + $0x30] sm:$0xff]  ;;  %s1552_s21 = smov 6   ;;  %vm298_vm2 = vcmask 523264   ;;  %s1553_s22 = smov 124  }
  0x39   :  { %v1341_v9 = vpack.c.bf16 %v104_v8, %v103_v7  ;;  %v1169_v12 = vld [vmem:[#allocation5] ss:$0 sm:$0xff]  ;;  %v1170_v13 = vld [vmem:[#allocation5 + $0x1] ss:$0 sm:$0xff]  ;;  %v1345_v29 = vpack.c.bf16 %v195_v28, %v194_v27  ;;  %v285_v30 = vld [vmem:[#allocation5 + $0x38] sm:$0xff]  ;;  %s1554_s23 = smov 16  }
  0x3a   :  { %1338 = vmatprep.subr.bf16.mxu0 %v1337_v6  ;;  %v1171_v20 = vld [vmem:[#allocation7] ss:$0 sm:$0xff]  ;;  %v1172_v33 = vld [vmem:[#allocation7 + $0x1] ss:$0 sm:$0xff]  ;;  %v287_v38 = vld [vmem:[#allocation5 + $0x48] sm:$0xff]  ;;  %s1555_s26 = smov 12  }
  0x3b   :  { %1340 = vmatpush3.bf16.msra.mxu0 %v1337_v6  ;;  %1346 = vmatprep.subr.bf16.mxu1 %v1345_v29  ;;  %v286_v31 = vld [vmem:[#allocation5 + $0x40] sm:$0xff]  ;;  %v288_v39 = vld [vmem:[#allocation5 + $0x50] sm:$0xff]  ;;  %v289_v43 = vld [vmem:[#allocation5 + $0x58] sm:$0xff]  ;;  %vm454_vm3 = vcmask 162816   ;;  %vm465_vm4 = vcmask 195584   ;;  %s1556_s27 = smov 122  }
  0x3c   :  { %1417 = vset.pattern.permute.xlu1 %v1550_v5  ;;  %1415 = vset.pattern.permute.xlu0 %v1550_v5  ;;  %v1349_v32 = vpack.c.bf16 %v286_v31, %v285_v30  ;;  %v1353_v42 = vpack.c.bf16 %v288_v39, %v287_v38  ;;  %v290_v44 = vld [vmem:[#allocation5 + $0x60] sm:$0xff]  ;;  %v291_v46 = vld [vmem:[#allocation5 + $0x68] sm:$0xff]  ;;  %v292_v47 = vld [vmem:[#allocation5 + $0x70] sm:$0xff]  ;;  %s1557_s28 = smov 10   ;;  %vm787_vm5 = vcmask 31744   ;;  %vm790_vm6 = vcmask 64512  }
  0x3d   :  { %82 = vperm.xlu1 %1417, %v1633_v1   ;;  %78 = vperm.xlu0 %1415, %v1635_v2   ;;  %v1357_v45 = vpack.c.bf16 %v290_v44, %v289_v43  ;;  %v1361_v48 = vpack.c.bf16 %v292_v47, %v291_v46  ;;  %v1175_v49 = vld [vmem:[#allocation7 + $0x2] ss:$0 sm:$0xff]  ;;  %v1178_v56 = vld [vmem:[#allocation7 + $0x3] ss:$0 sm:$0xff]  ;;  %v457_v27 = vld [vmem:[#allocation5 + $0x78] sm:$0xff]  ;;  %vm793_vm7 = vcmask 80896  }
  0x3e   :  { %1342 = vmatprep.subr.bf16.mxu0 %v1341_v9  ;;  %1348 = vmatpush3.bf16.msra.mxu1 %v1345_v29  ;;  %v458_v28 = vld [vmem:[#allocation5 + $0x80] sm:$0xff]  ;;  %v459_v30 = vld [vmem:[#allocation5 + $0x88] sm:$0xff]  ;;  %v549_v31 = vld [vmem:[#allocation5 + $0x90] sm:$0xff]  ;;  %vm796_vm8 = vcmask 113664   ;;  %s1558_s29 = smov 14   ;;  %s1559_s30 = smov 114  }
  0x3f   :  { %1344 = vmatpush3.bf16.msra.mxu0 %v1341_v9  ;;  %1350 = vmatprep.subr.bf16.mxu1 %v1349_v32  ;;  %v1365_v29 = vpack.c.bf16 %v458_v28, %v457_v27  ;;  %vm1141_vm9 = vcmask 97280   ;;  %vm1146_vm10 = vcmask 171008   ;;  %s1560_s4 = smov [#allocation8]  }
  0x40   :  { %s1156_s5 = sshll.u32 %s1560_s4, 4  ;;  %s1157_s5 = int_to_ptr.vmem [resolvable:$true] %s1156_s5 }
  0x41   :  { %402 = vrot.lane.b32.xlu0 %v1633_v1, %s1551_s2  ;;  %400 = vrot.lane.b32.xlu1 %v1635_v2, %s1551_s2  ;;  %s1516_s6 = scalar_lea.vmem %s1157_s5, 256  ;;  %p1521_p11 = scmp.lt.s32.totalorder %s1157_s5, %s1157_s5 }
  0x42   :  { %1366 = vmatprep.subr.bf16.mxu0 %v1365_v29  ;;  %p1517_p10 = scmp.ne.s32.totalorder %s1157_s5, %s1516_s6  ;;  %p1522_p12 = scmp.lt.s32.totalorder %s1516_s6, %s1516_s6 }
  0x44   :  { %p1523_p13 = por %p1522_p12, %p1521_p11 }
  0x45   :  { %420 = vrot.lane.b32.xlu0 %v1633_v1, %s1552_s21  ;;  %418 = vrot.lane.b32.xlu1 %v1635_v2, %s1552_s21 }
  0x46   :  { %p1524_p0 = pnand %p1523_p13, %p1517_p10 }
  0xb7   :  { %v64_v10 = vpop.permute.xlu0 %63  ;;  %v69_v11 = vpop.permute.xlu1 %68 }
  0xb8   :  { %v75_v16 = vmul.f32 %v1169_v12, %v64_v10  ;;  %v76_v17 = vmul.f32 %v1169_v12, %v69_v11 }
  0xbc   :  { %v83_v14 = vpop.permute.xlu1 %82  ;;  %v79_v15 = vpop.permute.xlu0 %78 }
  0xbd   :  { %v90_v18 = vmul.f32 %v1170_v13, %v83_v14  ;;  %v89_v19 = vmul.f32 %v1170_v13, %v79_v15 }
  0xbf   :  { %v92_v21 = vadd.f32 %v90_v18, %v76_v17  ;;  %v91_v22 = vadd.f32 %v89_v19, %v75_v16 }
  0xc0   :  { %v403_v13 = vpop.permute.xlu0 %402  ;;  %v401_v17 = vpop.permute.xlu1 %400 }
  0xc1   :  { %v97_v23 = vadd.f32 %v1171_v20, %v91_v22  ;;  %v98_v24 = vadd.f32 %v1171_v20, %v92_v21 }
  0xc3   :  { %v99_v25 = vmax.f32 %v97_v23, 0.0  ;;  %v100_v26 = vmax.f32 %v98_v24, 0.0 }
  0xc4   :  { %v421_v23 = vpop.permute.xlu0 %420  ;;  %v419_v24 = vpop.permute.xlu1 %418 }
  0xc5   :  { %1256 = vmatprep.mubr.msk.f32.mxu0 %vm110_vm0, %v99_v25 }
  0xc6   :  { %1257 = vmatmul.mubr.msk.f32.vlgmr.msra.gmra.mrb[0].mxu0 %vm110_vm0, %v100_v26 }
  0xc7   :  { %1368 = vmatpush3.bf16.msra.mxu0 %v1365_v29 }
  0xc8   :  { %1289 = vmatprep.subr.mxu0 %v459_v30 }
  0xcb   :  { %1290 = vmatpush3.msra.mxu0 %v459_v30 }
 0x199   :  { %v1258_v34 = vpop.f32.mrb[0].mxu0 }
 0x19a   :  { %v1643_v35 = vadd.f32 %v1258_v34, %v1172_v33  ;;  %v183_v36 = vpop.f32.mrb[1].mxu0 }
 0x19b   :  { %v1645_v37 = vadd.f32 %v1172_v33, %v183_v36 }
 0x19c   :  { %v193_v41 = vmax.f32 %v1643_v35, 0.0 }
 0x19d   :  { %v192_v40 = vmax.f32 %v1645_v37, 0.0  ;;  %v1181_v37 = vld [vmem:[#allocation7 + $0x4] ss:$0 sm:$0xff] }
 0x19f   :  { %1263 = vmatprep.mubr.msk.f32.mxu1 %vm201_vm1, %v192_v40 }
 0x1a0   :  { %1264 = vmatmul.mubr.msk.f32.vlgmr.msra.gmra.mrb[0].mxu1 %vm201_vm1, %v193_v41 }
 0x1a1   :  { %1352 = vmatpush3.bf16.msra.mxu1 %v1349_v32  ;;  %v550_v32 = vld [vmem:[#allocation5 + $0x98] sm:$0xff] }
 0x1a2   :  { %1354 = vmatprep.subr.bf16.mxu1 %v1353_v42  ;;  %v1369_v33 = vpack.c.bf16 %v550_v32, %v549_v31 }
 0x1a4   :  { %1370 = vmatprep.subr.bf16.mxu0 %v1369_v33 }
 0x1a5   :  { %1356 = vmatpush3.bf16.msra.mxu1 %v1353_v42 }
 0x1a6   :  { %1358 = vmatprep.subr.bf16.mxu1 %v1357_v45 }
 0x1a9   :  { %1360 = vmatpush3.bf16.msra.mxu1 %v1357_v45 }
 0x1aa   :  { %1362 = vmatprep.subr.bf16.mxu1 %v1361_v48 }
 0x1ad   :  { %1364 = vmatpush3.bf16.msra.mxu1 %v1361_v48 }
 0x273   :  { %v1265_v50 = vpop.f32.mrb[0].mxu1 }
 0x274   :  { %v280_v51 = vadd.f32 %v1265_v50, %v1175_v49  ;;  %v274_v52 = vpop.f32.mrb[1].mxu1 }
 0x275   :  { %v275_v53 = vadd.f32 %v1175_v49, %v274_v52 }
 0x276   :  { %v284_v55 = vmax.f32 %v280_v51, 0.0 }
 0x277   :  { %v283_v54 = vmax.f32 %v275_v53, 0.0 }
 0x279   :  { %1282 = vmatprep.mubr.msk.f32.mxu1 %vm298_vm2, %v283_v54  ;;  %v551_v54 = vld [vmem:[#allocation5 + $0xa0] sm:$0xff] }
 0x27a   :  { %1283 = vmatmul.mubr.msk.f32.vlgmr.msra.gmra.mrb[2].mxu1 %vm298_vm2, %v284_v55  ;;  %v552_v55 = vld [vmem:[#allocation5 + $0xa8] sm:$0xff] }
 0x34d   :  { %v1284_v57 = vpop.f32.mrb[2].mxu1 }
 0x34e   :  { %v377_v58 = vadd.f32 %v1284_v57, %v1178_v56  ;;  %v371_v59 = vpop.f32.mrb[3].mxu1 }
 0x34f   :  { %v372_v60 = vadd.f32 %v1178_v56, %v371_v59  ;;  %v1373_v56 = vpack.c.bf16 %v552_v55, %v551_v54 }
 0x350   :  { %v383_v61 = vand.u32 2147483647, %v377_v58  ;;  %v381_v11 = vmax.f32 %v377_v58, 0.0 }
 0x351   :  { %v382_v62 = vand.u32 2147483647, %v372_v60  ;;  %v380_v14 = vmax.f32 %v372_v60, 0.0 }
 0x352   :  { %v385_v63 = vsub.f32 0.0, %v383_v61  ;;  %v642_v61 = vld [vmem:[#allocation5 + $0xb8] sm:$0xff] }
 0x353   :  { %v384_v0 = vsub.f32 0.0, %v382_v62 }
 0x354   :  { %v388_v3 = vmul.f32 1.442695, %v385_v63  ;;  %v1184_v63 = vld [vmem:[#allocation7 + $0x5] ss:$0 sm:$0xff] }
 0x355   :  { %v386_v4 = vmul.f32 1.442695, %v384_v0 }
 0x356   :  { %1418 = vpow2.f32 %v388_v3 }
 0x357   :  { %1420 = vpow2.f32 %v386_v4 }
 0x360   :  { %v1419_v5 = vpop.eup %1418 }
 0x361   :  { %v1421_v6 = vpop.eup %1420  ;;  %v391_v7 = vadd.f32 1.0, %v1419_v5 }
 0x362   :  { %v390_v8 = vadd.f32 1.0, %v1421_v6 }
 0x363   :  { %1422 = vlog2.f32 %v391_v7 }
 0x364   :  { %1424 = vlog2.f32 %v390_v8  ;;  %v1187_v8 = vld [vmem:[#allocation7 + $0x6] ss:$0 sm:$0xff] }
 0x36d   :  { %v1423_v9 = vpop.eup %1422 }
 0x36e   :  { %v1425_v10 = vpop.eup %1424  ;;  %v395_v12 = vmul.f32 0.6931472, %v1423_v9 }
 0x36f   :  { %v393_v15 = vmul.f32 0.6931472, %v1425_v10 }
 0x370   :  { %v397_v16 = vadd.f32 %v395_v12, %v381_v11 }
 0x371   :  { %v396_v18 = vadd.f32 %v393_v15, %v380_v14 }
 0x372   :  { %v399_v19 = vadd.f32 1e-09, %v397_v16 }
 0x373   :  { %v398_v20 = vadd.f32 1e-09, %v396_v18 }
 0x374   :  { %v407_v21 = vmul.f32 %v403_v13, %v399_v19  ;;  %v425_v25 = vmul.f32 %v421_v23, %v399_v19 }
 0x375   :  { %v406_v22 = vmul.f32 %v401_v17, %v398_v20  ;;  %v424_v26 = vmul.f32 %v419_v24, %v398_v20 }
 0x376   :  { %412 = vrot.lane.b32.xlu0 %v407_v21, %s1553_s22 }
 0x377   :  { %410 = vrot.lane.b32.xlu1 %v406_v22, %s1553_s22 }
 0x37a   :  { %430 = vrot.lane.b32.xlu0 %v425_v25, %s1553_s22 }
 0x37b   :  { %428 = vrot.lane.b32.xlu1 %v424_v26, %s1553_s22 }
 0x3e8   :  { %v413_v34 = vpop.permute.xlu0 %412 }
 0x3e9   :  { %v1663_v36 = vadd.f32 %v413_v34, %v377_v58  ;;  %v411_v38 = vpop.permute.xlu1 %410  ;;  %v799_v34 = vld [vmem:[#allocation5 + $0xc0] sm:$0xff] }
 0x3ea   :  { %v1665_v39 = vadd.f32 %v411_v38, %v372_v60  ;;  %v800_v38 = vld [vmem:[#allocation5 + $0xc8] sm:$0xff] }
 0x3eb   :  { %440 = vrot.lane.b32.xlu0 %v1663_v36, %s1554_s23 }
 0x3ec   :  { %438 = vrot.lane.b32.xlu1 %v1665_v39, %s1554_s23  ;;  %v431_v42 = vpop.permute.xlu0 %430 }
 0x3ed   :  { %v1669_v43 = vadd.f32 %v431_v42, %v377_v58  ;;  %v429_v44 = vpop.permute.xlu1 %428 }
 0x3ee   :  { %v1671_v45 = vadd.f32 %v429_v44, %v372_v60  ;;  %v1381_v44 = vpack.c.bf16 %v800_v38, %v799_v34 }
 0x3ef   :  { %448 = vrot.lane.b32.xlu0 %v1669_v43, %s1555_s26 }
 0x3f0   :  { %446 = vrot.lane.b32.xlu1 %v1671_v45, %s1555_s26 }
 0x3f3   :  { %751 = vrot.lane.b32.xlu0 %v1633_v1, %s1556_s27 }
 0x3f4   :  { %749 = vrot.lane.b32.xlu1 %v1635_v2, %s1556_s27 }
 0x45d   :  { %v441_v46 = vpop.permute.xlu0 %440 }
 0x45e   :  { %v439_v47 = vpop.permute.xlu1 %438  ;;  %v453_v51 = vsel %vm201_vm1, %v193_v41, %v441_v46  ;;  %v641_v41 = vld [vmem:[#allocation5 + $0xb0] sm:$0xff] }
 0x45f   :  { %v452_v49 = vsel %vm201_vm1, %v192_v40, %v439_v47  ;;  %v1377_v62 = vpack.c.bf16 %v642_v61, %v641_v41 }
 0x461   :  { %v449_v48 = vpop.permute.xlu0 %448  ;;  %1378 = vmatprep.subr.bf16.mxu1 %v1377_v62 }
 0x462   :  { %v447_v50 = vpop.permute.xlu1 %446  ;;  %v456_v53 = vsel %vm454_vm3, %v453_v51, %v449_v48  ;;  %1380 = vmatpush3.bf16.msra.mxu1 %v1377_v62  ;;  %v889_v48 = vld [vmem:[#allocation5 + $0xd0] sm:$0xff] }
 0x463   :  { %v455_v52 = vsel %vm454_vm3, %v452_v49, %v447_v50  ;;  %v890_v49 = vld [vmem:[#allocation5 + $0xd8] sm:$0xff] }
 0x464   :  { %1291 = vmatprep.mubr.msk.f32.mxu0 %vm465_vm4, %v455_v52  ;;  %v1385_v50 = vpack.c.bf16 %v890_v49, %v889_v48 }
 0x465   :  { %1292 = vmatmul.mubr.msk.f32.vlgmr.msra.gmra.mrb[2].mxu0 %vm465_vm4, %v456_v53  ;;  %v752_v30 = vpop.permute.xlu0 %751 }
 0x466   :  { %1372 = vmatpush3.bf16.msra.mxu0 %v1369_v33  ;;  %v750_v33 = vpop.permute.xlu1 %749  ;;  %1386 = vmatprep.subr.bf16.mxu1 %v1385_v50 }
 0x467   :  { %1374 = vmatprep.subr.bf16.mxu0 %v1373_v56 }
 0x46a   :  { %1376 = vmatpush3.bf16.msra.mxu0 %v1373_v56 }
 0x46b   :  { %1382 = vmatprep.subr.bf16.mxu0 %v1381_v44 }
 0x538   :  { %v1293_v57 = vpop.f32.mrb[2].mxu0 }
 0x539   :  { %v544_v40 = vadd.f32 %v1293_v57, %v1181_v37  ;;  %v538_v58 = vpop.f32.mrb[3].mxu0 }
 0x53a   :  { %v539_v59 = vadd.f32 %v1181_v37, %v538_v58 }
 0x53b   :  { %v548_v60 = vmax.f32 %v544_v40, 0.0 }
 0x53c   :  { %v547_v35 = vmax.f32 %v539_v59, 0.0 }
 0x53e   :  { %1302 = vmatprep.mubr.msk.f32.mxu0 %vm110_vm0, %v547_v35 }
 0x53f   :  { %1303 = vmatmul.mubr.msk.f32.vlgmr.msra.gmra.mrb[4].mxu0 %vm110_vm0, %v548_v60 }
 0x540   :  { %1384 = vmatpush3.bf16.msra.mxu0 %v1381_v44 }
 0x612   :  { %v1304_v0 = vpop.f32.mrb[4].mxu0 }
 0x613   :  { %v636_v3 = vadd.f32 %v1304_v0, %v1184_v63  ;;  %v630_v4 = vpop.f32.mrb[5].mxu0  ;;  %v1190_v0 = vld [vmem:[#allocation7 + $0x7] ss:$0 sm:$0xff] }
 0x614   :  { %v631_v5 = vadd.f32 %v1184_v63, %v630_v4 }
 0x615   :  { %v640_v7 = vmax.f32 %v636_v3, 0.0 }
 0x616   :  { %v639_v6 = vmax.f32 %v631_v5, 0.0 }
 0x618   :  { %1309 = vmatprep.mubr.msk.f32.mxu1 %vm201_vm1, %v639_v6 }
 0x619   :  { %1310 = vmatmul.mubr.msk.f32.vlgmr.msra.gmra.mrb[4].mxu1 %vm201_vm1, %v640_v7 }
 0x61a   :  { %1388 = vmatpush3.bf16.msra.mxu1 %v1385_v50 }
 0x6ec   :  { %v1311_v9 = vpop.f32.mrb[4].mxu1 }
 0x6ed   :  { %v726_v10 = vadd.f32 %v1311_v9, %v1187_v8  ;;  %v720_v11 = vpop.f32.mrb[5].mxu1  ;;  %v981_v9 = vld [vmem:[#allocation5 + $0xf0] sm:$0xff] }
 0x6ee   :  { %v721_v12 = vadd.f32 %v1187_v8, %v720_v11 }
 0x6ef   :  { %v732_v13 = vand.u32 2147483647, %v726_v10  ;;  %v730_v25 = vmax.f32 %v726_v10, 0.0 }
 0x6f0   :  { %v731_v14 = vand.u32 2147483647, %v721_v12  ;;  %v729_v27 = vmax.f32 %v721_v12, 0.0 }
 0x6f1   :  { %v734_v15 = vsub.f32 0.0, %v732_v13 }
 0x6f2   :  { %v733_v16 = vsub.f32 0.0, %v731_v14 }
 0x6f3   :  { %v737_v17 = vmul.f32 1.442695, %v734_v15 }
 0x6f4   :  { %v735_v18 = vmul.f32 1.442695, %v733_v16 }
 0x6f5   :  { %1426 = vpow2.f32 %v737_v17 }
 0x6f6   :  { %1428 = vpow2.f32 %v735_v18 }
 0x6ff   :  { %v1427_v19 = vpop.eup %1426 }
 0x700   :  { %v1429_v20 = vpop.eup %1428  ;;  %v740_v21 = vadd.f32 1.0, %v1427_v19  ;;  %v1196_v19 = vld [vmem:[#allocation7 + $0x9] ss:$0 sm:$0xff] }
 0x701   :  { %v739_v22 = vadd.f32 1.0, %v1429_v20 }
 0x702   :  { %1430 = vlog2.f32 %v740_v21 }
 0x703   :  { %1432 = vlog2.f32 %v739_v22 }
 0x70c   :  { %v1431_v23 = vpop.eup %1430 }
 0x70d   :  { %v1433_v24 = vpop.eup %1432  ;;  %v744_v26 = vmul.f32 0.6931472, %v1431_v23 }
 0x70e   :  { %v742_v28 = vmul.f32 0.6931472, %v1433_v24 }
 0x70f   :  { %v746_v29 = vadd.f32 %v744_v26, %v730_v25 }
 0x710   :  { %v745_v31 = vadd.f32 %v742_v28, %v729_v27 }
 0x711   :  { %v748_v32 = vadd.f32 1e-09, %v746_v29 }
 0x712   :  { %v747_v42 = vadd.f32 1e-09, %v745_v31 }
 0x713   :  { %v756_v46 = vmul.f32 %v752_v30, %v748_v32 }
 0x714   :  { %v755_v47 = vmul.f32 %v750_v33, %v747_v42 }
 0x715   :  { %761 = vrot.lane.b32.xlu0 %v756_v46, %s1553_s22 }
 0x716   :  { %759 = vrot.lane.b32.xlu1 %v755_v47, %s1553_s22 }
 0x719   :  { %769 = vrot.lane.b32.xlu0 %v1669_v43, %s1553_s22 }
 0x71a   :  { %767 = vrot.lane.b32.xlu1 %v1671_v45, %s1553_s22 }
 0x71d   :  { %775 = vrot.lane.b32.xlu0 %v1633_v1, %s1547_s25 }
 0x71e   :  { %773 = vrot.lane.b32.xlu1 %v1635_v2, %s1547_s25 }
 0x787   :  { %v762_v51 = vpop.permute.xlu0 %761 }
 0x788   :  { %v1701_v52 = vadd.f32 %v762_v51, %v726_v10  ;;  %v760_v53 = vpop.permute.xlu1 %759  ;;  %v982_v10 = vld [vmem:[#allocation5 + $0xf8] sm:$0xff] }
 0x789   :  { %v1703_v54 = vadd.f32 %v760_v53, %v721_v12  ;;  %v1393_v11 = vpack.c.bf16 %v982_v10, %v981_v9  ;;  %v1193_v12 = vld [vmem:[#allocation7 + $0x8] ss:$0 sm:$0xff] }
 0x78a   :  { %783 = vrot.lane.b32.xlu0 %v1701_v52, %s1557_s28 }
 0x78b   :  { %781 = vrot.lane.b32.xlu1 %v1703_v54, %s1557_s28  ;;  %v770_v43 = vpop.permute.xlu0 %769  ;;  %1394 = vmatprep.subr.bf16.mxu0 %v1393_v11 }
 0x78c   :  { %v768_v45 = vpop.permute.xlu1 %767  ;;  %v1708_v37 = vsel %vm787_vm5, %v1663_v36, %v770_v43  ;;  %v891_v36 = vld [vmem:[#allocation5 + $0xe0] sm:$0xff] }
 0x78d   :  { %v1711_v57 = vsel %vm787_vm5, %v1665_v39, %v768_v45  ;;  %v892_v39 = vld [vmem:[#allocation5 + $0xe8] sm:$0xff] }
 0x78e   :  { %v1389_v63 = vpack.c.bf16 %v892_v39, %v891_v36 }
 0x78f   :  { %v776_v55 = vpop.permute.xlu0 %775 }
 0x790   :  { %v774_v56 = vpop.permute.xlu1 %773  ;;  %v792_v40 = vsel %vm790_vm6, %v1708_v37, %v776_v55  ;;  %1390 = vmatprep.subr.bf16.mxu1 %v1389_v63 }
 0x791   :  { %v791_v59 = vsel %vm790_vm6, %v1711_v57, %v774_v56  ;;  %1392 = vmatpush3.bf16.msra.mxu1 %v1389_v63 }
 0x7fc   :  { %v784_v58 = vpop.permute.xlu0 %783 }
 0x7fd   :  { %v795_v35 = vsel %vm793_vm7, %v792_v40, %v784_v58  ;;  %v782_v60 = vpop.permute.xlu1 %781 }
 0x7fe   :  { %v794_v41 = vsel %vm793_vm7, %v791_v59, %v782_v60  ;;  %v798_v62 = vsel %vm796_vm8, %v795_v35, 0.0 }
 0x7ff   :  { %v797_v61 = vsel %vm796_vm8, %v794_v41, 0.0 }
 0x800   :  { %1316 = vmatprep.mubr.msk.f32.mxu0 %vm201_vm1, %v797_v61 }
 0x801   :  { %1317 = vmatmul.mubr.msk.f32.vlgmr.msra.gmra.mrb[6].mxu0 %vm201_vm1, %v798_v62 }
 0x802   :  { %1396 = vmatpush3.bf16.msra.mxu0 %v1393_v11 }
 0x8d4   :  { %v1318_v3 = vpop.f32.mrb[6].mxu0 }
 0x8d5   :  { %v884_v4 = vadd.f32 %v1318_v3, %v1190_v0  ;;  %v878_v5 = vpop.f32.mrb[7].mxu0 }
 0x8d6   :  { %v879_v6 = vadd.f32 %v1190_v0, %v878_v5 }
 0x8d7   :  { %v888_v8 = vmax.f32 %v884_v4, 0.0 }
 0x8d8   :  { %v887_v7 = vmax.f32 %v879_v6, 0.0 }
 0x8da   :  { %1327 = vmatprep.mubr.msk.f32.mxu1 %vm110_vm0, %v887_v7 }
 0x8db   :  { %1328 = vmatmul.mubr.msk.f32.vlgmr.msra.gmra.mrb[6].mxu1 %vm110_vm0, %v888_v8 }
 0x9ae   :  { %v1329_v13 = vpop.f32.mrb[6].mxu1 }
 0x9af   :  { %v976_v14 = vadd.f32 %v1329_v13, %v1193_v12  ;;  %v970_v15 = vpop.f32.mrb[7].mxu1 }
 0x9b0   :  { %v971_v16 = vadd.f32 %v1193_v12, %v970_v15 }
 0x9b1   :  { %v980_v18 = vmax.f32 %v976_v14, 0.0 }
 0x9b2   :  { %v979_v17 = vmax.f32 %v971_v16, 0.0 }
 0x9b4   :  { %1334 = vmatprep.mubr.msk.f32.mxu0 %vm201_vm1, %v979_v17 }
 0x9b5   :  { %1335 = vmatmul.mubr.msk.f32.vlgmr.msra.gmra.mrb[8].mxu0 %vm201_vm1, %v980_v18 }
 0xa88   :  { %v1336_v20 = vpop.f32.mrb[8].mxu0 }
 0xa89   :  { %v1066_v21 = vadd.f32 %v1336_v20, %v1196_v19  ;;  %v1060_v22 = vpop.f32.mrb[9].mxu0 }
 0xa8a   :  { %v1061_v23 = vadd.f32 %v1196_v19, %v1060_v22 }
 0xa8b   :  { %1103 = vrot.lane.b32.xlu0 %v1066_v21, %s1558_s29  ;;  %v1084_v28 = vand.u32 2147483647, %v1066_v21  ;;  %v1070_v44 = vsub.f32 0.0, %v1066_v21 }
 0xa8c   :  { %1101 = vrot.lane.b32.xlu1 %v1061_v23, %s1558_s29  ;;  %v1083_v29 = vand.u32 2147483647, %v1061_v23  ;;  %v1069_v42 = vsub.f32 0.0, %v1061_v23  ;;  %v1081_v53 = vmax.f32 %v1061_v23, 0.0 }
 0xa8d   :  { %v1086_v30 = vsub.f32 0.0, %v1084_v28  ;;  %v1073_v49 = vmul.f32 1.442695, %v1070_v44 }
 0xa8e   :  { %v1085_v31 = vsub.f32 0.0, %v1083_v29  ;;  %v1071_v46 = vmul.f32 1.442695, %v1069_v42 }
 0xa8f   :  { %v1089_v32 = vmul.f32 1.442695, %v1086_v30 }
 0xa90   :  { %v1087_v33 = vmul.f32 1.442695, %v1085_v31 }
 0xa91   :  { %1434 = vpow2.f32 %v1089_v32 }
 0xa92   :  { %1436 = vpow2.f32 %v1087_v33 }
 0xafd   :  { %v1104_v24 = vpop.permute.xlu0 %1103 }
 0xafe   :  { %v1108_v25 = vmul.f32 %v1104_v24, %v1633_v1  ;;  %v1102_v26 = vpop.permute.xlu1 %1101  ;;  %v1435_v1 = vpop.eup %1434 }
 0xaff   :  { %v1107_v27 = vmul.f32 %v1102_v26, %v1635_v2  ;;  %v1437_v34 = vpop.eup %1436  ;;  %v1092_v2 = vadd.f32 1.0, %v1435_v1 }
 0xb00   :  { %1113 = vrot.lane.b32.xlu0 %v1108_v25, %s1559_s30  ;;  %v1091_v38 = vadd.f32 1.0, %v1437_v34 }
 0xb01   :  { %1111 = vrot.lane.b32.xlu1 %v1107_v27, %s1559_s30  ;;  %1438 = vlog2.f32 %v1092_v2 }
 0xb02   :  { %1440 = vlog2.f32 %v1091_v38 }
 0xb03   :  { %1442 = vpow2.f32 %v1071_v46 }
 0xb04   :  { %1125 = vrot.lane.b32.xlu0 %v1703_v54, %s1547_s25  ;;  %1444 = vpow2.f32 %v1073_v49 }
 0xb05   :  { %1127 = vrot.lane.b32.xlu1 %v1701_v52, %s1547_s25  ;;  %v1082_v52 = vmax.f32 %v1066_v21, 0.0 }
 0xb0b   :  { %v1439_v47 = vpop.eup %1438 }
 0xb0c   :  { %v1441_v48 = vpop.eup %1440  ;;  %v1096_v50 = vmul.f32 0.6931472, %v1439_v47 }
 0xb0d   :  { %v1094_v51 = vmul.f32 0.6931472, %v1441_v48  ;;  %v1443_v59 = vpop.eup %1442 }
 0xb0e   :  { %v1098_v54 = vadd.f32 %v1096_v50, %v1082_v52  ;;  %v1075_v60 = vadd.f32 1.0, %v1443_v59  ;;  %v1445_v41 = vpop.eup %1444 }
 0xb0f   :  { %v1097_v45 = vadd.f32 %v1094_v51, %v1081_v53  ;;  %v1076_v61 = vadd.f32 1.0, %v1445_v41 }
 0xb10   :  { %1446 = vrcp.f32 %v1075_v60 }
 0xb11   :  { %1448 = vrcp.f32 %v1076_v61 }
 0xb1a   :  { %v1447_v62 = vpop.eup %1446 }
 0xb1b   :  { %v1449_v36 = vpop.eup %1448 }
 0xb72   :  { %v1114_v43 = vpop.permute.xlu0 %1113 }
 0xb73   :  { %v1118_v55 = vsub.f32 %v1098_v54, %v1114_v43  ;;  %v1112_v56 = vpop.permute.xlu1 %1111 }
 0xb74   :  { %v1117_v40 = vsub.f32 %v1097_v45, %v1112_v56 }
 0xb75   :  { %v1122_v58 = vsel %vm790_vm6, %v1118_v55, 0.0 }
 0xb76   :  { %1123 = vadd.xlane.f32.xlu0 %v1122_v58  ;;  %v1119_v35 = vsel %vm790_vm6, %v1117_v40, 0.0  ;;  %v1126_v39 = vpop.permute.xlu0 %1125 }
 0xb77   :  { %1120 = vadd.xlane.f32.xlu1 %v1119_v35  ;;  %v1128_v63 = vpop.permute.xlu1 %1127  ;;  %v1139_v6 = vsel %vm790_vm6, %v1711_v57, %v1126_v39 }
 0xb78   :  { %v1140_v4 = vsel %vm790_vm6, %v1708_v37, %v1128_v63 }
 0xb88   :  { %1133 = vrot.lane.b32.xlu1 %v1447_v62, %s1555_s26 }
 0xb8c   :  { %1135 = vrot.lane.b32.xlu0 %v1449_v36, %s1555_s26 }
 0xc03   :  { %v1124_v0 = vpop.xlane.xlu0 %1123 }
 0xc04   :  { %v1121_v3 = vpop.xlane.xlu1 %1120 }
 0xc07   :  { %v1136_v5 = vpop.permute.xlu0 %1135 }
 0xc08   :  { %v1143_v7 = vsel %vm1141_vm9, %v1140_v4, %v1136_v5  ;;  %v1134_v8 = vpop.permute.xlu1 %1133 }
 0xc09   :  { %v1145_v9 = vsel %vm454_vm3, %v1143_v7, %v1124_v0  ;;  %v1142_v10 = vsel %vm1141_vm9, %v1139_v6, %v1134_v8 }
 0xc0a   :  { %v1144_v11 = vsel %vm454_vm3, %v1142_v10, %v1121_v3  ;;  %v1148_v12 = vsel %vm1146_vm10, %v1145_v9, 0.0 }
 0xc0b   :  { %v1147_v13 = vsel %vm1146_vm10, %v1144_v11, 0.0  ;;  %1150 = vst [vmem:[#allocation8 + $0x8] sm:$0xff] %v1148_v12 }
 0xc0c   :  { %1149 = vst [vmem:[#allocation8] sm:$0xff] %v1147_v13 }
 0xc0d   :  { %1527 = shalt.err (!%p1524_p0)
}
 0xc0e   :  { %s1528_s1 = scalar_lea.hbm %s1757_s3, 256 }
 0xc0f   :  { %p1529_p1 = scmp.ne.s32.totalorder %s1757_s3, %s1528_s1  ;;  %p1532_p2 = scmp.lt.u32.totalorder %s1528_s1, %s1757_s3 }
 0xc11   :  { %p1534_p3 = pnand %p1532_p2, %p1529_p1 }
 0xc13   :  { %1537 = shalt.err (!%p1534_p3)
}
 0xc14   :  { %1162 = dma.vmem_to_hbm [thread:$0]  %s1157_s5, 256, %s1757_s3, [#allocation4], %s1546_s24, %s1546_s24, %s1547_s25  }
 0xc15   :  { %1542 = dma.done.wait [#allocation4], 256  }
 0xc16   :  { %1543 = vsyncadd [#allocation4], 4294967040 }
 0xc17   :  { %1166 = vsyncpa [#allocation3], 1 }
 0xc18   :  { %1167 = vsyncpa [#allocation6], 1 }
 0xc19   :  { %1168 = vsyncpa [#allocation4], 1 }

</bundles_post_ra>
